<compile_context>
chip_gen: v7x
topology: tpu7x:2x2x1
jax: 0.10.0
libtpu: 0.0.40
codegen_flags: <defaults>
</compile_context>

<pallas_src>
import functools

import jax
import jax.numpy as jnp
from jax.experimental import pallas as pl
from jax.experimental.pallas import tpu as pltpu


def _round_up(x, m):
    return ((x + m - 1) // m) * m


def _sm_kernel(design_t_ref, params_ref, out_ref, *, num_fibers, nb_nz, shared_exps):
    """One (sample tile, vertex tile) block.

    design_t_ref : (3, tV)                 transposed design, vertex-tiled
    params_ref   : (tN, F*stride)          packed per-sample/per-fiber scalars
    out_ref      : (nb_nz, tN, tV)         lane-dense per-nonzero-bval slabs

    shared layout  (stride = 6 + nb_nz):
        per fiber: [dx, dy, dz, w*z, -b_min*D_a, -b_min*(D_par-D_perp),
                    c_0 .. c_{nb_nz-1}]           c_ib = w*(1-z)*exp(-b_ib*D_perp)
    fallback layout (stride = 4 + 3*nb_nz):
        per fiber: [dx, dy, dz, w*z] + per shell [-b*D_a, -b*(D_par-D_perp), c_ib]
    """
    g = design_t_ref[...]                      # (3, tV)
    gx = g[0:1, :]
    gy = g[1:2, :]
    gz = g[2:3, :]

    p = params_ref[...]                        # (tN, F*stride)
    stride = (6 + nb_nz) if shared_exps is not None else (4 + 3 * nb_nz)

    for f in range(num_fibers):
        base = stride * f
        dx = p[:, base + 0:base + 1]           # (tN, 1)
        dy = p[:, base + 1:base + 2]
        dz = p[:, base + 2:base + 3]
        wz = p[:, base + 3:base + 4]

        # inner products: three broadcast FMAs on the VPU, lane-dense in tV.
        t = dx * gx + dy * gy + dz * gz        # (tN, tV)
        t2 = t * t

        if shared_exps is not None:
            # 2 EUP exps per fiber, shared across ALL nonzero shells.
            a_a = p[:, base + 4:base + 5]
            a_d = p[:, base + 5:base + 6]
            e_a = jnp.exp(a_a * t2)            # exp(-b_min*D_a*t^2)
            e_d = jnp.exp(a_d * t2)            # exp(-b_min*(D_par-D_perp)*t^2)

            order = sorted(range(nb_nz), key=lambda j: shared_exps[j])
            pa = None
            pd = None
            kcur = 0
            for ib in order:
                k = shared_exps[ib]
                for _ in range(k - kcur):      # cumulative VPU powers
                    pa = e_a if pa is None else pa * e_a
                    pd = e_d if pd is None else pd * e_d
                kcur = k
                c = p[:, base + 6 + ib:base + 7 + ib]
                contrib = wz * pa + c * pd
                if f == 0:
                    out_ref[ib] = contrib
                else:
                    out_ref[ib] = out_ref[ib] + contrib
        else:
            # Fallback: per-shell exps (non-integer shell ratios).
            for ib in range(nb_nz):
                off = base + 4 + 3 * ib
                a_a = p[:, off:off + 1]
                a_d = p[:, off + 1:off + 2]
                c = p[:, off + 2:off + 3]
                contrib = wz * jnp.exp(a_a * t2) + c * jnp.exp(a_d * t2)
                if f == 0:
                    out_ref[ib] = contrib
                else:
                    out_ref[ib] = out_ref[ib] + contrib


def simulator_sm_direct(design, directs, weights, shapes, bvals, *,
                        tile_n=256, tile_v=512):
    """Pallas implementation of SimulatorObjectSMDirect.forward.

    Returns {'Stensor': (Nsamples, len(bvals), nverts) float32}.
    """
    design = jnp.asarray(design, jnp.float32)
    directs = jnp.asarray(directs, jnp.float32)
    weights = jnp.asarray(weights, jnp.float32)
    shapes = jnp.asarray(shapes, jnp.float32)

    nsamples, num_fibers, _ = directs.shape
    nverts = design.shape[0]
    bvals_f = [float(b) for b in bvals]
    nb = len(bvals_f)

    # b == 0 plane is rank-1: StandardModel(., 0, ...) == 1 -> row is sum_f w_f.
    w_sum = jnp.sum(weights, axis=-1)                       # (N,)

    nz_bvals = [b for b in bvals_f if b != 0.0]
    nb_nz = len(nz_bvals)
    if nb_nz == 0:
        stensor = jnp.broadcast_to(
            w_sum[:, None, None], (nsamples, nb, nverts)).astype(jnp.float32)
        return {"Stensor": stensor}

    # Shared exponential base across shells (integer multiples of b_min)?
    b_min = min(nz_bvals)
    ratios = [b / b_min for b in nz_bvals]
    int_exps = [int(round(r)) for r in ratios]
    shared = (max(int_exps) <= 16) and all(
        abs(r - k) <= 1e-6 * max(1.0, abs(r)) for r, k in zip(ratios, int_exps))
    shared_exps = tuple(int_exps) if shared else None
    stride = (6 + nb_nz) if shared else (4 + 3 * nb_nz)

    # ---- tiling ----------------------------------------------------------
    v_ceil = _round_up(nverts, 128)
    tile_v = max(128, (int(tile_v) // 128) * 128)
    tile_v = min(tile_v, v_ceil)
    v_pad = _round_up(nverts, tile_v)
    grid_v = v_pad // tile_v

    # tile_n <= ceil(N/2) (multiple of 8) so >=2 grid steps feed both v7x TCs.
    half_n = max(8, _round_up((nsamples + 1) // 2, 8))
    tile_n = max(8, min((int(tile_n) // 8) * 8, half_n))
    n_pad = _round_up(nsamples, tile_n)
    grid_n = n_pad // tile_n

    # ---- packed inputs ---------------------------------------------------
    design_t = jnp.zeros((3, v_pad), jnp.float32).at[:, :nverts].set(design.T)

    dx = directs[:, :, 0]
    dy = directs[:, :, 1]
    dz = directs[:, :, 2]
    d_a = shapes[:, :, 0]
    d_par = shapes[:, :, 1]
    d_perp = shapes[:, :, 2]
    z = shapes[:, :, 3]
    wz = weights * z
    w1z = weights * (1.0 - z)

    cols = [dx, dy, dz, wz]
    if shared:
        cols += [-b_min * d_a, -b_min * (d_par - d_perp)]
        for b in nz_bvals:
            cols.append(w1z * jnp.exp(-b * d_perp))
    else:
        for b in nz_bvals:
            cols += [-b * d_a, -b * (d_par - d_perp), w1z * jnp.exp(-b * d_perp)]
    params = jnp.stack(cols, axis=-1).reshape(nsamples, num_fibers * stride)
    if n_pad != nsamples:
        params = jnp.pad(params, ((0, n_pad - nsamples), (0, 0)))

    kernel = functools.partial(
        _sm_kernel, num_fibers=num_fibers, nb_nz=nb_nz, shared_exps=shared_exps)

    # ---- cost / VMEM budget ----------------------------------------------
    elems = n_pad * v_pad * num_fibers
    trans_per_elem = 2 if shared else 2 * nb_nz
    cost = pl.CostEstimate(
        flops=int(elems * (8 + 6 * nb_nz)),
        transcendentals=int(elems * trans_per_elem),
        bytes_accessed=int(4 * (design_t.size * grid_n
                                + params.size * grid_v
                                + nb_nz * n_pad * v_pad)),
    )

    out_block = nb_nz * tile_n * tile_v * 4
    in_block = (3 * tile_v + tile_n * num_fibers * stride) * 4
    slab = tile_n * tile_v * 4
    vmem_est = 2 * (out_block + in_block) + 8 * slab
    vmem_limit = int(min(48 * 1024 * 1024,
                         max(32 * 1024 * 1024, int(1.5 * vmem_est))))

    out_nz = pl.pallas_call(
        kernel,
        out_shape=jax.ShapeDtypeStruct((nb_nz, n_pad, v_pad), jnp.float32),
        grid_spec=pltpu.PrefetchScalarGridSpec(
            num_scalar_prefetch=0,
            grid=(grid_n, grid_v),
            in_specs=[
                pl.BlockSpec((3, tile_v), lambda i, j: (0, j)),               # design^T
                pl.BlockSpec((tile_n, num_fibers * stride), lambda i, j: (i, 0)),  # params
            ],
            out_specs=pl.BlockSpec((nb_nz, tile_n, tile_v), lambda i, j: (0, i, j)),
        ),
        compiler_params=pltpu.CompilerParams(
            dimension_semantics=("parallel", "parallel"),
            vmem_limit_bytes=vmem_limit,
        ),
        cost_estimate=cost,
    )(design_t, params)

    # (nb_nz, Npad, Vpad) -> (N, nb_nz, V); drop padding.
    # TODO(synk): consumers that can accept the bval-major (nb, N, V) layout
    # should use out_nz directly and skip this transpose (a full extra HBM pass).
    stensor_nz = jnp.transpose(out_nz[:, :nsamples, :nverts], (1, 0, 2))

    if nb_nz == nb:
        stensor = stensor_nz
    else:
        b0_plane = jnp.broadcast_to(w_sum[:, None, None], (nsamples, 1, nverts))
        planes = []
        nzi = 0
        for b in bvals_f:
            if b == 0.0:
                planes.append(b0_plane)
            else:
                planes.append(stensor_nz[:, nzi:nzi + 1, :])
                nzi += 1
        stensor = jnp.concatenate(planes, axis=1)

    return {"Stensor": stensor}


def _reference(design, directs, weights, shapes, bvals):
    """Pure-JAX reference mirroring the PyTorch loops (for correctness check)."""
    nsamples, num_fibers, _ = directs.shape
    nverts = design.shape[0]
    nb = len(bvals)
    out = jnp.zeros((nsamples, nb, nverts), jnp.float32)
    for nf in range(num_fibers):
        t = directs[:, nf, :] @ design.T                      # (N, V)
        d_a = shapes[:, nf, 0:1]
        d_par = shapes[:, nf, 1:2]
        d_perp = shapes[:, nf, 2:3]
        z = shapes[:, nf, 3:4]
        w = weights[:, nf:nf + 1]
        for ib, b in enumerate(bvals):
            fwd = z * jnp.exp(-b * d_a * t ** 2) + (1.0 - z) * jnp.exp(
                -b * d_perp - b * (d_par - d_perp) * t ** 2)
            out = out.at[:, ib, :].add(w * fwd)
    return out


if __name__ == "__main__":
    key = jax.random.PRNGKey(0)
    k1, k2, k3, k4 = jax.random.split(key, 4)

    nsamples, num_fibers, nverts = 16, 3, 16

    # design directions on the unit sphere
    design = jax.random.normal(k1, (nverts, 3), jnp.float32)
    design = design / jnp.linalg.norm(design, axis=-1, keepdims=True)

    # per-sample, per-fiber unit directions
    directs = jax.random.normal(k2, (nsamples, num_fibers, 3), jnp.float32)
    directs = directs / jnp.linalg.norm(directs, axis=-1, keepdims=True)

    # positive fiber weights and shape params [D_a, D_e_par, D_e_perp, z_frac]
    weights = jax.random.uniform(k3, (nsamples, num_fibers), jnp.float32, 0.1, 1.0)
    shapes = jax.random.uniform(k4, (nsamples, num_fibers, 4), jnp.float32, 0.1, 1.0)

    # --- case 1: typical multi-shell (integer multiples -> shared-base path,
    #             b=0 fast path, megacore-friendly grid of 2 sample tiles) ---
    bvals1 = [0.0, 1.0, 2.0, 3.0]
    out1 = simulator_sm_direct(design, directs, weights, shapes, bvals1)
    st1 = jax.block_until_ready(out1["Stensor"])
    ref1 = _reference(design, directs, weights, shapes, bvals1)
    assert st1.shape == (nsamples, len(bvals1), nverts)
    assert jnp.allclose(st1, ref1, atol=1e-5, rtol=1e-5)

    # --- case 2: non-integer shell ratio -> fallback exp path; also exercises
    #             sample/vertex padding and a b=0 in a non-leading position ---
    bvals2 = [1.0, 2.5, 0.0]
    design2 = design[:13]
    directs2, weights2, shapes2 = directs[:13], weights[:13], shapes[:13]
    out2 = simulator_sm_direct(design2, directs2, weights2, shapes2, bvals2)
    st2 = jax.block_until_ready(out2["Stensor"])
    ref2 = _reference(design2, directs2, weights2, shapes2, bvals2)
    assert st2.shape == (13, len(bvals2), 13)
    assert jnp.allclose(st2, ref2, atol=1e-5, rtol=1e-5)

    print("KERNEL_OK")
</pallas_src>

<mosaic_0001>
module attributes {stable_mosaic.version = 11 : i64} {
  func.func @_sm_kernel(%arg0: i32, %arg1: i32, %arg2: memref<3x128xf32, #tpu.memory_space<vmem>>, %arg3: memref<8x27xf32, #tpu.memory_space<vmem>>, %arg4: memref<3x8x128xf32, #tpu.memory_space<vmem>>) attributes {dimension_semantics = [#tpu.dimension_semantics<parallel>, #tpu.dimension_semantics<parallel>], iteration_bounds = array<i64: 2, 1>, scalar_prefetch = 0 : i64, scratch_operands = 0 : i64, tpu.core_type = #tpu.core_type<tc>, window_params = [{transform_indices = @transform_0, window_bounds = array<i64: 3, 128>}, {transform_indices = @transform_1, window_bounds = array<i64: 8, 27>}, {transform_indices = @transform_2, window_bounds = array<i64: 3, 8, 128>}]} {
    %c0 = arith.constant 0 : index
    %c0_0 = arith.constant 0 : index
    %0 = vector.load %arg2[%c0, %c0_0] : memref<3x128xf32, #tpu.memory_space<vmem>>, vector<3x128xf32>
    %1 = vector.extract_strided_slice %0 {offsets = [0, 0], sizes = [1, 128], strides = [1, 1]} : vector<3x128xf32> to vector<1x128xf32>
    %2 = vector.extract_strided_slice %0 {offsets = [1, 0], sizes = [1, 128], strides = [1, 1]} : vector<3x128xf32> to vector<1x128xf32>
    %3 = vector.extract_strided_slice %0 {offsets = [2, 0], sizes = [1, 128], strides = [1, 1]} : vector<3x128xf32> to vector<1x128xf32>
    %c0_1 = arith.constant 0 : index
    %c0_2 = arith.constant 0 : index
    %4 = vector.load %arg3[%c0_1, %c0_2] : memref<8x27xf32, #tpu.memory_space<vmem>>, vector<8x27xf32>
    %5 = vector.extract_strided_slice %4 {offsets = [0, 0], sizes = [8, 1], strides = [1, 1]} : vector<8x27xf32> to vector<8x1xf32>
    %6 = vector.extract_strided_slice %4 {offsets = [0, 1], sizes = [8, 1], strides = [1, 1]} : vector<8x27xf32> to vector<8x1xf32>
    %7 = vector.extract_strided_slice %4 {offsets = [0, 2], sizes = [8, 1], strides = [1, 1]} : vector<8x27xf32> to vector<8x1xf32>
    %8 = vector.extract_strided_slice %4 {offsets = [0, 3], sizes = [8, 1], strides = [1, 1]} : vector<8x27xf32> to vector<8x1xf32>
    %9 = vector.broadcast %5 : vector<8x1xf32> to vector<8x128xf32>
    %10 = vector.broadcast %1 : vector<1x128xf32> to vector<8x128xf32>
    %11 = arith.mulf %9, %10 : vector<8x128xf32>
    %12 = vector.broadcast %6 : vector<8x1xf32> to vector<8x128xf32>
    %13 = vector.broadcast %2 : vector<1x128xf32> to vector<8x128xf32>
    %14 = arith.mulf %12, %13 : vector<8x128xf32>
    %15 = arith.addf %11, %14 : vector<8x128xf32>
    %16 = vector.broadcast %7 : vector<8x1xf32> to vector<8x128xf32>
    %17 = vector.broadcast %3 : vector<1x128xf32> to vector<8x128xf32>
    %18 = arith.mulf %16, %17 : vector<8x128xf32>
    %19 = arith.addf %15, %18 : vector<8x128xf32>
    %20 = arith.mulf %19, %19 : vector<8x128xf32>
    %21 = vector.extract_strided_slice %4 {offsets = [0, 4], sizes = [8, 1], strides = [1, 1]} : vector<8x27xf32> to vector<8x1xf32>
    %22 = vector.extract_strided_slice %4 {offsets = [0, 5], sizes = [8, 1], strides = [1, 1]} : vector<8x27xf32> to vector<8x1xf32>
    %23 = vector.broadcast %21 : vector<8x1xf32> to vector<8x128xf32>
    %24 = arith.mulf %23, %20 : vector<8x128xf32>
    %25 = math.exp %24 : vector<8x128xf32>
    %26 = vector.broadcast %22 : vector<8x1xf32> to vector<8x128xf32>
    %27 = arith.mulf %26, %20 : vector<8x128xf32>
    %28 = math.exp %27 : vector<8x128xf32>
    %29 = vector.extract_strided_slice %4 {offsets = [0, 6], sizes = [8, 1], strides = [1, 1]} : vector<8x27xf32> to vector<8x1xf32>
    %30 = vector.broadcast %8 : vector<8x1xf32> to vector<8x128xf32>
    %31 = arith.mulf %30, %25 : vector<8x128xf32>
    %32 = vector.broadcast %29 : vector<8x1xf32> to vector<8x128xf32>
    %33 = arith.mulf %32, %28 : vector<8x128xf32>
    %34 = arith.addf %31, %33 : vector<8x128xf32>
    %c0_3 = arith.constant 0 : index
    %c0_4 = arith.constant 0 : index
    %c0_5 = arith.constant 0 : index
    %35 = vector.load %arg4[%c0_3, %c0_4, %c0_5] : memref<3x8x128xf32, #tpu.memory_space<vmem>>, vector<1x8x128xf32>
    %36 = vector.shape_cast %35 : vector<1x8x128xf32> to vector<8x128xf32>
    %37 = vector.shape_cast %34 : vector<8x128xf32> to vector<1x8x128xf32>
    tpu.vector_store %arg4[%c0_3, %c0_4, %c0_5], %37 {strides = array<i32>} : memref<3x8x128xf32, #tpu.memory_space<vmem>>, vector<1x8x128xf32>,
    %38 = arith.mulf %25, %25 : vector<8x128xf32>
    %39 = arith.mulf %28, %28 : vector<8x128xf32>
    %40 = vector.extract_strided_slice %4 {offsets = [0, 7], sizes = [8, 1], strides = [1, 1]} : vector<8x27xf32> to vector<8x1xf32>
    %41 = vector.broadcast %8 : vector<8x1xf32> to vector<8x128xf32>
    %42 = arith.mulf %41, %38 : vector<8x128xf32>
    %43 = vector.broadcast %40 : vector<8x1xf32> to vector<8x128xf32>
    %44 = arith.mulf %43, %39 : vector<8x128xf32>
    %45 = arith.addf %42, %44 : vector<8x128xf32>
    %c1 = arith.constant 1 : index
    %c0_6 = arith.constant 0 : index
    %c0_7 = arith.constant 0 : index
    %46 = vector.load %arg4[%c1, %c0_6, %c0_7] : memref<3x8x128xf32, #tpu.memory_space<vmem>>, vector<1x8x128xf32>
    %47 = vector.shape_cast %46 : vector<1x8x128xf32> to vector<8x128xf32>
    %48 = vector.shape_cast %45 : vector<8x128xf32> to vector<1x8x128xf32>
    tpu.vector_store %arg4[%c1, %c0_6, %c0_7], %48 {strides = array<i32>} : memref<3x8x128xf32, #tpu.memory_space<vmem>>, vector<1x8x128xf32>,
    %49 = arith.mulf %38, %25 : vector<8x128xf32>
    %50 = arith.mulf %39, %28 : vector<8x128xf32>
    %51 = vector.extract_strided_slice %4 {offsets = [0, 8], sizes = [8, 1], strides = [1, 1]} : vector<8x27xf32> to vector<8x1xf32>
    %52 = vector.broadcast %8 : vector<8x1xf32> to vector<8x128xf32>
    %53 = arith.mulf %52, %49 : vector<8x128xf32>
    %54 = vector.broadcast %51 : vector<8x1xf32> to vector<8x128xf32>
    %55 = arith.mulf %54, %50 : vector<8x128xf32>
    %56 = arith.addf %53, %55 : vector<8x128xf32>
    %c2 = arith.constant 2 : index
    %c0_8 = arith.constant 0 : index
    %c0_9 = arith.constant 0 : index
    %57 = vector.load %arg4[%c2, %c0_8, %c0_9] : memref<3x8x128xf32, #tpu.memory_space<vmem>>, vector<1x8x128xf32>
    %58 = vector.shape_cast %57 : vector<1x8x128xf32> to vector<8x128xf32>
    %59 = vector.shape_cast %56 : vector<8x128xf32> to vector<1x8x128xf32>
    tpu.vector_store %arg4[%c2, %c0_8, %c0_9], %59 {strides = array<i32>} : memref<3x8x128xf32, #tpu.memory_space<vmem>>, vector<1x8x128xf32>,
    %60 = vector.extract_strided_slice %4 {offsets = [0, 9], sizes = [8, 1], strides = [1, 1]} : vector<8x27xf32> to vector<8x1xf32>
    %61 = vector.extract_strided_slice %4 {offsets = [0, 10], sizes = [8, 1], strides = [1, 1]} : vector<8x27xf32> to vector<8x1xf32>
    %62 = vector.extract_strided_slice %4 {offsets = [0, 11], sizes = [8, 1], strides = [1, 1]} : vector<8x27xf32> to vector<8x1xf32>
    %63 = vector.extract_strided_slice %4 {offsets = [0, 12], sizes = [8, 1], strides = [1, 1]} : vector<8x27xf32> to vector<8x1xf32>
    %64 = vector.broadcast %60 : vector<8x1xf32> to vector<8x128xf32>
    %65 = vector.broadcast %1 : vector<1x128xf32> to vector<8x128xf32>
    %66 = arith.mulf %64, %65 : vector<8x128xf32>
    %67 = vector.broadcast %61 : vector<8x1xf32> to vector<8x128xf32>
    %68 = vector.broadcast %2 : vector<1x128xf32> to vector<8x128xf32>
    %69 = arith.mulf %67, %68 : vector<8x128xf32>
    %70 = arith.addf %66, %69 : vector<8x128xf32>
    %71 = vector.broadcast %62 : vector<8x1xf32> to vector<8x128xf32>
    %72 = vector.broadcast %3 : vector<1x128xf32> to vector<8x128xf32>
    %73 = arith.mulf %71, %72 : vector<8x128xf32>
    %74 = arith.addf %70, %73 : vector<8x128xf32>
    %75 = arith.mulf %74, %74 : vector<8x128xf32>
    %76 = vector.extract_strided_slice %4 {offsets = [0, 13], sizes = [8, 1], strides = [1, 1]} : vector<8x27xf32> to vector<8x1xf32>
    %77 = vector.extract_strided_slice %4 {offsets = [0, 14], sizes = [8, 1], strides = [1, 1]} : vector<8x27xf32> to vector<8x1xf32>
    %78 = vector.broadcast %76 : vector<8x1xf32> to vector<8x128xf32>
    %79 = arith.mulf %78, %75 : vector<8x128xf32>
    %80 = math.exp %79 : vector<8x128xf32>
    %81 = vector.broadcast %77 : vector<8x1xf32> to vector<8x128xf32>
    %82 = arith.mulf %81, %75 : vector<8x128xf32>
    %83 = math.exp %82 : vector<8x128xf32>
    %84 = vector.extract_strided_slice %4 {offsets = [0, 15], sizes = [8, 1], strides = [1, 1]} : vector<8x27xf32> to vector<8x1xf32>
    %85 = vector.broadcast %63 : vector<8x1xf32> to vector<8x128xf32>
    %86 = arith.mulf %85, %80 : vector<8x128xf32>
    %87 = vector.broadcast %84 : vector<8x1xf32> to vector<8x128xf32>
    %88 = arith.mulf %87, %83 : vector<8x128xf32>
    %89 = arith.addf %86, %88 : vector<8x128xf32>
    %c0_10 = arith.constant 0 : index
    %c0_11 = arith.constant 0 : index
    %c0_12 = arith.constant 0 : index
    %90 = vector.load %arg4[%c0_10, %c0_11, %c0_12] : memref<3x8x128xf32, #tpu.memory_space<vmem>>, vector<1x8x128xf32>
    %91 = vector.shape_cast %90 : vector<1x8x128xf32> to vector<8x128xf32>
    %92 = arith.addf %91, %89 : vector<8x128xf32>
    %c0_13 = arith.constant 0 : index
    %c0_14 = arith.constant 0 : index
    %c0_15 = arith.constant 0 : index
    %93 = vector.load %arg4[%c0_13, %c0_14, %c0_15] : memref<3x8x128xf32, #tpu.memory_space<vmem>>, vector<1x8x128xf32>
    %94 = vector.shape_cast %93 : vector<1x8x128xf32> to vector<8x128xf32>
    %95 = vector.shape_cast %92 : vector<8x128xf32> to vector<1x8x128xf32>
    tpu.vector_store %arg4[%c0_13, %c0_14, %c0_15], %95 {strides = array<i32>} : memref<3x8x128xf32, #tpu.memory_space<vmem>>, vector<1x8x128xf32>,
    %96 = arith.mulf %80, %80 : vector<8x128xf32>
    %97 = arith.mulf %83, %83 : vector<8x128xf32>
    %98 = vector.extract_strided_slice %4 {offsets = [0, 16], sizes = [8, 1], strides = [1, 1]} : vector<8x27xf32> to vector<8x1xf32>
    %99 = vector.broadcast %63 : vector<8x1xf32> to vector<8x128xf32>
    %100 = arith.mulf %99, %96 : vector<8x128xf32>
    %101 = vector.broadcast %98 : vector<8x1xf32> to vector<8x128xf32>
    %102 = arith.mulf %101, %97 : vector<8x128xf32>
    %103 = arith.addf %100, %102 : vector<8x128xf32>
    %c1_16 = arith.constant 1 : index
    %c0_17 = arith.constant 0 : index
    %c0_18 = arith.constant 0 : index
    %104 = vector.load %arg4[%c1_16, %c0_17, %c0_18] : memref<3x8x128xf32, #tpu.memory_space<vmem>>, vector<1x8x128xf32>
    %105 = vector.shape_cast %104 : vector<1x8x128xf32> to vector<8x128xf32>
    %106 = arith.addf %105, %103 : vector<8x128xf32>
    %c1_19 = arith.constant 1 : index
    %c0_20 = arith.constant 0 : index
    %c0_21 = arith.constant 0 : index
    %107 = vector.load %arg4[%c1_19, %c0_20, %c0_21] : memref<3x8x128xf32, #tpu.memory_space<vmem>>, vector<1x8x128xf32>
    %108 = vector.shape_cast %107 : vector<1x8x128xf32> to vector<8x128xf32>
    %109 = vector.shape_cast %106 : vector<8x128xf32> to vector<1x8x128xf32>
    tpu.vector_store %arg4[%c1_19, %c0_20, %c0_21], %109 {strides = array<i32>} : memref<3x8x128xf32, #tpu.memory_space<vmem>>, vector<1x8x128xf32>,
    %110 = arith.mulf %96, %80 : vector<8x128xf32>
    %111 = arith.mulf %97, %83 : vector<8x128xf32>
    %112 = vector.extract_strided_slice %4 {offsets = [0, 17], sizes = [8, 1], strides = [1, 1]} : vector<8x27xf32> to vector<8x1xf32>
    %113 = vector.broadcast %63 : vector<8x1xf32> to vector<8x128xf32>
    %114 = arith.mulf %113, %110 : vector<8x128xf32>
    %115 = vector.broadcast %112 : vector<8x1xf32> to vector<8x128xf32>
    %116 = arith.mulf %115, %111 : vector<8x128xf32>
    %117 = arith.addf %114, %116 : vector<8x128xf32>
    %c2_22 = arith.constant 2 : index
    %c0_23 = arith.constant 0 : index
    %c0_24 = arith.constant 0 : index
    %118 = vector.load %arg4[%c2_22, %c0_23, %c0_24] : memref<3x8x128xf32, #tpu.memory_space<vmem>>, vector<1x8x128xf32>
    %119 = vector.shape_cast %118 : vector<1x8x128xf32> to vector<8x128xf32>
    %120 = arith.addf %119, %117 : vector<8x128xf32>
    %c2_25 = arith.constant 2 : index
    %c0_26 = arith.constant 0 : index
    %c0_27 = arith.constant 0 : index
    %121 = vector.load %arg4[%c2_25, %c0_26, %c0_27] : memref<3x8x128xf32, #tpu.memory_space<vmem>>, vector<1x8x128xf32>
    %122 = vector.shape_cast %121 : vector<1x8x128xf32> to vector<8x128xf32>
    %123 = vector.shape_cast %120 : vector<8x128xf32> to vector<1x8x128xf32>
    tpu.vector_store %arg4[%c2_25, %c0_26, %c0_27], %123 {strides = array<i32>} : memref<3x8x128xf32, #tpu.memory_space<vmem>>, vector<1x8x128xf32>,
    %124 = vector.extract_strided_slice %4 {offsets = [0, 18], sizes = [8, 1], strides = [1, 1]} : vector<8x27xf32> to vector<8x1xf32>
    %125 = vector.extract_strided_slice %4 {offsets = [0, 19], sizes = [8, 1], strides = [1, 1]} : vector<8x27xf32> to vector<8x1xf32>
    %126 = vector.extract_strided_slice %4 {offsets = [0, 20], sizes = [8, 1], strides = [1, 1]} : vector<8x27xf32> to vector<8x1xf32>
    %127 = vector.extract_strided_slice %4 {offsets = [0, 21], sizes = [8, 1], strides = [1, 1]} : vector<8x27xf32> to vector<8x1xf32>
    %128 = vector.broadcast %124 : vector<8x1xf32> to vector<8x128xf32>
    %129 = vector.broadcast %1 : vector<1x128xf32> to vector<8x128xf32>
    %130 = arith.mulf %128, %129 : vector<8x128xf32>
    %131 = vector.broadcast %125 : vector<8x1xf32> to vector<8x128xf32>
    %132 = vector.broadcast %2 : vector<1x128xf32> to vector<8x128xf32>
    %133 = arith.mulf %131, %132 : vector<8x128xf32>
    %134 = arith.addf %130, %133 : vector<8x128xf32>
    %135 = vector.broadcast %126 : vector<8x1xf32> to vector<8x128xf32>
    %136 = vector.broadcast %3 : vector<1x128xf32> to vector<8x128xf32>
    %137 = arith.mulf %135, %136 : vector<8x128xf32>
    %138 = arith.addf %134, %137 : vector<8x128xf32>
    %139 = arith.mulf %138, %138 : vector<8x128xf32>
    %140 = vector.extract_strided_slice %4 {offsets = [0, 22], sizes = [8, 1], strides = [1, 1]} : vector<8x27xf32> to vector<8x1xf32>
    %141 = vector.extract_strided_slice %4 {offsets = [0, 23], sizes = [8, 1], strides = [1, 1]} : vector<8x27xf32> to vector<8x1xf32>
    %142 = vector.broadcast %140 : vector<8x1xf32> to vector<8x128xf32>
    %143 = arith.mulf %142, %139 : vector<8x128xf32>
    %144 = math.exp %143 : vector<8x128xf32>
    %145 = vector.broadcast %141 : vector<8x1xf32> to vector<8x128xf32>
    %146 = arith.mulf %145, %139 : vector<8x128xf32>
    %147 = math.exp %146 : vector<8x128xf32>
    %148 = vector.extract_strided_slice %4 {offsets = [0, 24], sizes = [8, 1], strides = [1, 1]} : vector<8x27xf32> to vector<8x1xf32>
    %149 = vector.broadcast %127 : vector<8x1xf32> to vector<8x128xf32>
    %150 = arith.mulf %149, %144 : vector<8x128xf32>
    %151 = vector.broadcast %148 : vector<8x1xf32> to vector<8x128xf32>
    %152 = arith.mulf %151, %147 : vector<8x128xf32>
    %153 = arith.addf %150, %152 : vector<8x128xf32>
    %c0_28 = arith.constant 0 : index
    %c0_29 = arith.constant 0 : index
    %c0_30 = arith.constant 0 : index
    %154 = vector.load %arg4[%c0_28, %c0_29, %c0_30] : memref<3x8x128xf32, #tpu.memory_space<vmem>>, vector<1x8x128xf32>
    %155 = vector.shape_cast %154 : vector<1x8x128xf32> to vector<8x128xf32>
    %156 = arith.addf %155, %153 : vector<8x128xf32>
    %c0_31 = arith.constant 0 : index
    %c0_32 = arith.constant 0 : index
    %c0_33 = arith.constant 0 : index
    %157 = vector.load %arg4[%c0_31, %c0_32, %c0_33] : memref<3x8x128xf32, #tpu.memory_space<vmem>>, vector<1x8x128xf32>
    %158 = vector.shape_cast %157 : vector<1x8x128xf32> to vector<8x128xf32>
    %159 = vector.shape_cast %156 : vector<8x128xf32> to vector<1x8x128xf32>
    tpu.vector_store %arg4[%c0_31, %c0_32, %c0_33], %159 {strides = array<i32>} : memref<3x8x128xf32, #tpu.memory_space<vmem>>, vector<1x8x128xf32>,
    %160 = arith.mulf %144, %144 : vector<8x128xf32>
    %161 = arith.mulf %147, %147 : vector<8x128xf32>
    %162 = vector.extract_strided_slice %4 {offsets = [0, 25], sizes = [8, 1], strides = [1, 1]} : vector<8x27xf32> to vector<8x1xf32>
    %163 = vector.broadcast %127 : vector<8x1xf32> to vector<8x128xf32>
    %164 = arith.mulf %163, %160 : vector<8x128xf32>
    %165 = vector.broadcast %162 : vector<8x1xf32> to vector<8x128xf32>
    %166 = arith.mulf %165, %161 : vector<8x128xf32>
    %167 = arith.addf %164, %166 : vector<8x128xf32>
    %c1_34 = arith.constant 1 : index
    %c0_35 = arith.constant 0 : index
    %c0_36 = arith.constant 0 : index
    %168 = vector.load %arg4[%c1_34, %c0_35, %c0_36] : memref<3x8x128xf32, #tpu.memory_space<vmem>>, vector<1x8x128xf32>
    %169 = vector.shape_cast %168 : vector<1x8x128xf32> to vector<8x128xf32>
    %170 = arith.addf %169, %167 : vector<8x128xf32>
    %c1_37 = arith.constant 1 : index
    %c0_38 = arith.constant 0 : index
    %c0_39 = arith.constant 0 : index
    %171 = vector.load %arg4[%c1_37, %c0_38, %c0_39] : memref<3x8x128xf32, #tpu.memory_space<vmem>>, vector<1x8x128xf32>
    %172 = vector.shape_cast %171 : vector<1x8x128xf32> to vector<8x128xf32>
    %173 = vector.shape_cast %170 : vector<8x128xf32> to vector<1x8x128xf32>
    tpu.vector_store %arg4[%c1_37, %c0_38, %c0_39], %173 {strides = array<i32>} : memref<3x8x128xf32, #tpu.memory_space<vmem>>, vector<1x8x128xf32>,
    %174 = arith.mulf %160, %144 : vector<8x128xf32>
    %175 = arith.mulf %161, %147 : vector<8x128xf32>
    %176 = vector.extract_strided_slice %4 {offsets = [0, 26], sizes = [8, 1], strides = [1, 1]} : vector<8x27xf32> to vector<8x1xf32>
    %177 = vector.broadcast %127 : vector<8x1xf32> to vector<8x128xf32>
    %178 = arith.mulf %177, %174 : vector<8x128xf32>
    %179 = vector.broadcast %176 : vector<8x1xf32> to vector<8x128xf32>
    %180 = arith.mulf %179, %175 : vector<8x128xf32>
    %181 = arith.addf %178, %180 : vector<8x128xf32>
    %c2_40 = arith.constant 2 : index
    %c0_41 = arith.constant 0 : index
    %c0_42 = arith.constant 0 : index
    %182 = vector.load %arg4[%c2_40, %c0_41, %c0_42] : memref<3x8x128xf32, #tpu.memory_space<vmem>>, vector<1x8x128xf32>
    %183 = vector.shape_cast %182 : vector<1x8x128xf32> to vector<8x128xf32>
    %184 = arith.addf %183, %181 : vector<8x128xf32>
    %c2_43 = arith.constant 2 : index
    %c0_44 = arith.constant 0 : index
    %c0_45 = arith.constant 0 : index
    %185 = vector.load %arg4[%c2_43, %c0_44, %c0_45] : memref<3x8x128xf32, #tpu.memory_space<vmem>>, vector<1x8x128xf32>
    %186 = vector.shape_cast %185 : vector<1x8x128xf32> to vector<8x128xf32>
    %187 = vector.shape_cast %184 : vector<8x128xf32> to vector<1x8x128xf32>
    tpu.vector_store %arg4[%c2_43, %c0_44, %c0_45], %187 {strides = array<i32>} : memref<3x8x128xf32, #tpu.memory_space<vmem>>, vector<1x8x128xf32>,
    return
  }
  func.func @transform_0(%arg0: i32, %arg1: i32) -> (i32, i32) {
    %c0_i32 = arith.constant 0 : i32
    %c0_i32_0 = arith.constant 0 : i32
    return %c0_i32, %arg1 : i32, i32
  }
  func.func @transform_1(%arg0: i32, %arg1: i32) -> (i32, i32) {
    %c0_i32 = arith.constant 0 : i32
    %c0_i32_0 = arith.constant 0 : i32
    return %arg0, %c0_i32 : i32, i32
  }
  func.func @transform_2(%arg0: i32, %arg1: i32) -> (i32, i32, i32) {
    %c0_i32 = arith.constant 0 : i32
    %c0_i32_0 = arith.constant 0 : i32
    return %c0_i32, %arg0, %arg1 : i32, i32, i32
  }
}

</mosaic_0001>

<bundles_post_ra>
// kernel: tpu_custom_call.1
= control target key start
LH: loop header
LB: loop body
LE: loop exit
PB: predicated region body
PF: predicated region fallthrough
CT: control target
= control target key end

     0   :  { %7 = vsyncpa [#allocation3], 0  ;;  %s1132_s0 = inlined_call_operand.hbm [shape: f32[3,128], index: 0, kind: input, shape index: {}]   ;;  %s1133_s1 = inlined_call_operand.hbm [shape: f32[16,27], index: 1, kind: input, shape index: {}]   ;;  %s1134_s2 = inlined_call_operand.hbm [shape: f32[3,16,128], index: 2, kind: output, shape index: {}]  }
   0x1   :  { %8 = vsyncpa [#allocation6], 0 }
   0x2   :  { %10 = vsyncpa [#allocation6 + $0x1], 0 }
   0x3   :  { %11 = vsyncpa [#allocation4], 0 }
   0x4   :  { %13 = vsyncpa [#allocation4 + $0x1], 0  ;;  %s884_s9 = smov 0   ;;  %s886_s10 = smov 0  }
   0x5   :  { %s888_s11 = smov 0   ;;  %s890_s12 = smov 0  }
   0x6   :  { %s892_s13 = smov 0   ;;  %s894_s14 = smov 0  }
   0x7 LB: > { %s524_s15 = sadd.s32 4294967295, %s834_s14   ;;  %s525_s16 = sadd.s32 4294967294, %s834_s14   ;;  %s834_s14 = sphi %s894_s14, %s19_s14   ;;  %s830_s13 = sphi %s892_s13, %s1159_s13   ;;  %s826_s12 = sphi %s890_s12, %s1158_s12   ;;  %s822_s11 = sphi %s888_s11, %s1157_s11   ;;  %s818_s10 = sphi %s886_s10, %s1156_s10   ;;  %s814_s9 = sphi %s884_s9, %s1155_s9  }
   0x8   : > { %p77_p0 = scmp.ne.s32.totalorder %s818_s10, %s814_s9  ;;  %p918_p1 = scmp.eq.s32.totalorder %s524_s15, 0 }
   0x9   : > { %p922_p2 = scmp.eq.s32.totalorder %s524_s15, 1  ;;  %p109_p3 = scmp.eq.s32.totalorder %s525_s16, 1 }
   0xa   : > { %s1139_s17 = scalar_select %p918_p1, 1, 0 }
   0xb   : > { %s1140_s18 = scalar_select %p922_p2, 1, 0 }
   0xc   : > { %p928_p4 = por %p918_p1, %p77_p0  ;;  %p526_p5 = scmp.ge.s32.totalorder %s834_s14, 1 }
   0xd   : > { %p933_p6 = por %p109_p3, %p77_p0  ;;  %p116_p7 = scmp.lt.s32.totalorder %s834_s14, 3 }
   0xe   : > { %s1141_s19 = scalar_select %p928_p4, 1, 0 }
   0xf   : > { %s1142_s20 = scalar_select %p933_p6, 1, 0 }
  0x10   : > { %p938_p8 = pnand %p526_p5, %p116_p7  ;;  %s836_s22 = smov [#allocation2]  }
  0x11   : > { %s131_s23 = sshll.u32 %s836_s22, 4  ;;  %s31_s25 = sadd.s32 1, %s830_s13  ;;  %s132_s23 = int_to_ptr.vmem [resolvable:$true] %s131_s23 }
  0x12   : > { %s1143_s21 = scalar_select %p938_p8, 1, 0 }
  0x13   : > { %p556_p10 = pneg %p938_p8  ;;  %s64_s26 = sadd.s32 1, %s822_s11 }
  0x14   : > { %p953_p12 = scmp.ge.s32.totalorder %s31_s25, 2  ;;  %s690_s30 = scalar_lea.hbm %s1132_s0, 64 }
  0x15   : > { %p947_p11 = pnand %p556_p10, %p918_p1  ;;  %p691_p13 = scmp.ne.s32.totalorder %s1132_s0, %s690_s30 }
  0x16   : > { %s1145_s27 = scalar_select %p953_p12, 1, 0 }
  0x17   : > { %p692_p0 = pneg %p947_p11  ;;  %p697_p7 = scmp.lt.u32.totalorder %s690_s30, %s1132_s0 }
  0x19   : > { %p693_p3 = pnand %p692_p0, %p691_p13 }
  0x1b   : > { %p694_p5 = pneg %p693_p3 }
  0x1d   : > { %p699_p10 = pnand %p697_p7, %p694_p5 }
  0x1f   : > { %702 = shalt.err (!%p699_p10)
}
  0x20   : > { %s703_s7 = scalar_lea.vmem %s132_s23, 64  ;;  %p711_p1 = scmp.lt.s32.totalorder %s132_s23, %s132_s23 }
  0x21   : > { %p704_p9 = scmp.ne.s32.totalorder %s132_s23, %s703_s7  ;;  %p712_p8 = scmp.lt.s32.totalorder %s703_s7, %s703_s7 }
  0x23   : > { %p706_p6 = pnand %p704_p9, %p692_p0  ;;  %p713_p2 = por %p712_p8, %p711_p1 }
  0x25   : > { %p707_p4 = pneg %p706_p6 }
  0x27   : > { %p714_p12 = pnand %p713_p2, %p707_p4 }
  0x29   : > { %717 = shalt.err (!%p714_p12)
}
  0x2a   : > { %559 = dma.hbm_to_vmem [thread:$0]  (!%p947_p11), %s1132_s0, 64, %s132_s23, [#allocation3]  }
  0x2b   : > { %p1146_p1 = scmp.ne.s32.totalorder %s1145_s27, 0  ;;  %p71_p2 = scmp.ne.s32.totalorder %s822_s11, %s818_s10 }
  0x2c   : > { %p72_p4 = scmp.eq.s32.totalorder %s834_s14, 0  ;;  %p569_p6 = scmp.lt.s32.totalorder %s834_s14, 2 }
  0x2d   : > { %s1161_s25 = smov (%p1146_p1, %s31_s25), 0  ;;  %p1147_p12 = scmp.ne.s32.totalorder %s1140_s18, 0 }
  0x2e   : > { %s61_s16 = ssub.s32 %s830_s13, %s1161_s25  ;;  %p73_p9 = por %p72_p4, %p71_p2 }
  0x2f   : > { %p62_p8 = scmp.eq.s32.totalorder %s61_s16, 0  ;;  %p985_p13 = por %p1147_p12, %p71_p2 }
  0x30   : > { %s142_s24 = sand.u32 1, %s822_s11   ;;  %s530_s27 = sshll.u32 %s830_s13, 7 }
  0x31   : > { %s993_s28 = scalar_select %p62_p8, %s822_s11, %s64_s26  }
  0x32   : > { %s529_s23 = sshll.u32 %s142_s24, 3  ;;  %s999_s3 = scalar_lea.hbm %s1133_s1, %s530_s27 }
  0x33   : > { %s146_s18 = scalar_lea.vmem [#allocation5], %s529_s23  ;;  %p1003_p11 = pnand %p569_p6, %p73_p9 }
  0x34   : > { %s153_s4 = sshll.u32 %s146_s18, 4  ;;  %s143_s26 = scalar_lea.sflag [#allocation6], %s142_s24  ;;  %s1001_s4 = int_to_ptr.vmem [resolvable:$true] %s153_s4 }
  0x35   : > { %s718_s6 = scalar_lea.hbm %s999_s3, 128  ;;  %p720_p3 = pneg %p1003_p11 }
  0x36   : > { %p719_p0 = scmp.ne.s32.totalorder %s999_s3, %s718_s6  ;;  %s723_s15 = scalar_lea.hbm %s1133_s1, 256 }
  0x37   : > { %p724_p10 = scmp.lt.u32.totalorder %s999_s3, %s1133_s1  ;;  %p725_p1 = scmp.lt.u32.totalorder %s723_s15, %s718_s6 }
  0x38   : > { %p721_p5 = pnand %p720_p3, %p719_p0  ;;  %p727_p4 = scmp.lt.u32.totalorder %s718_s6, %s999_s3 }
  0x39   : > { %p726_p2 = por %p725_p1, %p724_p10 }
  0x3a   : > { %p722_p7 = pneg %p721_p5 }
  0x3b   : > { %p728_p6 = por %p727_p4, %p726_p2 }
  0x3d   : > { %p729_p8 = pnand %p728_p6, %p722_p7 }
  0x3f   : > { %732 = shalt.err (!%p729_p8)
}
  0x40   : > { %s733_s24 = scalar_lea.vmem %s1001_s4, 128  ;;  %s837_s27 = smov [#allocation5]  }
  0x41   : > { %p734_p9 = scmp.ne.s32.totalorder %s1001_s4, %s733_s24  ;;  %s738_s29 = sshll.u32 %s837_s27, 4  ;;  %s739_s29 = int_to_ptr.vmem [resolvable:$false] %s738_s29 }
  0x42   : > { %s740_s30 = scalar_lea.vmem %s739_s29, 256  ;;  %p741_p5 = scmp.lt.s32.totalorder %s1001_s4, %s739_s29 }
  0x43   : > { %p736_p12 = pnand %p734_p9, %p720_p3  ;;  %p742_p10 = scmp.lt.s32.totalorder %s740_s30, %s733_s24 }
  0x45   : > { %p737_p0 = pneg %p736_p12  ;;  %p743_p1 = por %p742_p10, %p741_p5 }
  0x47   : > { %p744_p2 = pnand %p743_p1, %p737_p0 }
  0x49   : > { %747 = shalt.err (!%p744_p2)
}
  0x4a   : > { %563 = dma.hbm_to_vmem [thread:$0]  (!%p1003_p11), %s999_s3, 128, %s1001_s4, %s143_s26  }
  0x4b   : > { %p1150_p7 = scmp.ne.s32.totalorder %s1143_s21, 0 }
  0x4c   : > { %p1151_p3 = scmp.ne.s32.totalorder (!%p1150_p7), %s1139_s17, 0 }
  0x4d   : > { %162 = sbr.rel (%p1150_p7) target bundleno = 321 (0x141), region = 28 }
  0x54   : > { %801 = dma.done.wait (%p1151_p3), [#allocation3], 64  }
  0x55   : > { %803 = vsyncadd (%p1151_p3), [#allocation3], 4294967232  ;;  %s1039_s18 = sand.u32 1, %s818_s10   ;;  %p1152_p4 = scmp.ne.s32.totalorder %s1141_s19, 0 }
  0x56   : > { %s533_s6 = sshll.u32 %s1039_s18, 3  ;;  %s169_s5 = scalar_lea.sflag [#allocation6], %s1039_s18 }
  0x57   : > { %s172_s7 = scalar_lea.vmem [#allocation5], %s533_s6 }
  0x58   : > { %805 = dma.done.wait (%p1152_p4), %s169_s5, 128  }
  0x59   : > { %807 = vsyncadd (%p1152_p4), %s169_s5, 4294967168  ;;  %v838_v0 = vmov 2   ;;  %v839_v1 = vmov 0   ;;  %v1047_v2 = vld [vmem:[%s172_s7] sm:$0xff]  ;;  %v840_v3 = vmov 4   ;;  %v841_v4 = vmov 1  }
  0x5a   : > { %653 = vset.pattern.permute.xlu1 %v838_v0  ;;  %651 = vset.pattern.permute.xlu0 %v839_v1  ;;  %v842_v5 = vmov 5   ;;  %v843_v6 = vmov 9   ;;  %v844_v7 = vmov 10   ;;  %v845_v8 = vmov 13   ;;  %v193_v38 = vld [vmem:[#allocation2] sm:$0x7] }
  0x5b   : > { %216 = vperm.xlu1 %653, %v1047_v2   ;;  %197 = vperm.xlu0 %651, %v1047_v2   ;;  %v846_v9 = vmov 11   ;;  %v847_v10 = vmov 19   ;;  %v848_v11 = vmov 14   ;;  %v849_v12 = vmov 23   ;;  %s547_s17 = smul.u32 24, %s1039_s18  ;;  %s544_s21 = sshll.u32 %s826_s12, 7 }
  0x5c   : > { %v850_v13 = vmov 18   ;;  %v851_v14 = vmov 7   ;;  %v852_v15 = vmov 20   ;;  %v853_v16 = vmov 15   ;;  %s1081_s8 = scalar_lea.hbm %s1134_s2, %s544_s21  ;;  %s415_s12 = scalar_lea.sflag [#allocation4], %s1039_s18 }
  0x5d   : > { %v854_v17 = vmov 22   ;;  %v855_v18 = vmov 21   ;;  %v856_v19 = vmov 3   ;;  %v857_v20 = vmov 26   ;;  %s192_s19 = scalar_lea.vmem [#allocation7], %s547_s17  ;;  %s865_s16 = smov [#allocation7]  }
  0x5e   : > { %v858_v21 = vmov 6   ;;  %v859_v22 = vmov 8   ;;  %v860_v23 = vmov 12   ;;  %v861_v24 = vmov 16   ;;  %s428_s3 = sshll.u32 %s192_s19, 4  ;;  %s752_s23 = sshll.u32 %s865_s16, 4  ;;  %s1083_s3 = int_to_ptr.vmem [resolvable:$true] %s428_s3  ;;  %s753_s23 = int_to_ptr.vmem [resolvable:$false] %s752_s23 }
  0x5f   : > { %654 = vset.pattern.permute.xlu1 %v840_v3  ;;  %652 = vset.pattern.permute.xlu0 %v841_v4  ;;  %v862_v25 = vmov 17   ;;  %v863_v26 = vmov 24   ;;  %v864_v27 = vmov 25   ;;  %v200_v30 = vlaneseq  ;;  %s748_s15 = scalar_lea.vmem %s1083_s3, 384  ;;  %s754_s24 = scalar_lea.vmem %s753_s23, 768 }
  0x60   : > { %227 = vperm.xlu1 %654, %v1047_v2   ;;  %206 = vperm.xlu0 %652, %v1047_v2   ;;  %p749_p11 = scmp.ne.s32.totalorder %s1083_s3, %s748_s15  ;;  %p755_p9 = scmp.lt.s32.totalorder %s1083_s3, %s753_s23 }
  0x61   : > { %v201_v33 = vshrl.u32 %v200_v30, 7  ;;  %p756_p12 = scmp.lt.s32.totalorder %s754_s24, %s748_s15 }
  0x62   : > { %p750_p6 = pnand %p749_p11, %p985_p13 }
  0x63   : > { %v202_v34 = vsub.s32 0, %v201_v33  ;;  %v211_v35 = vsub.s32 1, %v201_v33  ;;  %v221_v43 = vsub.s32 2, %v201_v33  ;;  %p757_p0 = por %p756_p12, %p755_p9 }
  0x64   : > { %655 = vset.pattern.permute.xlu1 %v842_v5  ;;  %656 = vset.pattern.permute.xlu0 %v843_v6  ;;  %p751_p8 = pneg %p750_p6 }
  0x65   : > { %234 = vperm.xlu1 %655, %v1047_v2   ;;  %275 = vperm.xlu0 %656, %v1047_v2   ;;  %v203_v39 = vrot.slane %v193_v38, %v202_v34  ;;  %v212_v40 = vrot.slane %v193_v38, %v211_v35  ;;  %v222_v46 = vrot.slane %v193_v38, %v221_v43 }
  0x66   : > { %p758_p5 = pnand %p757_p0, %p751_p8 }
  0x69   : > { %657 = vset.pattern.permute.xlu1 %v844_v7  ;;  %659 = vset.pattern.permute.xlu0 %v845_v8 }
  0x6a   : > { %280 = vperm.xlu1 %657, %v1047_v2   ;;  %293 = vperm.xlu0 %659, %v1047_v2  }
  0x6e   : > { %658 = vset.pattern.permute.xlu1 %v846_v9  ;;  %662 = vset.pattern.permute.xlu0 %v847_v10 }
  0x6f   : > { %286 = vperm.xlu1 %658, %v1047_v2   ;;  %350 = vperm.xlu0 %662, %v1047_v2  }
  0x73   : > { %660 = vset.pattern.permute.xlu1 %v848_v11  ;;  %665 = vset.pattern.permute.xlu0 %v849_v12 }
  0x74   : > { %300 = vperm.xlu1 %660, %v1047_v2   ;;  %370 = vperm.xlu0 %665, %v1047_v2  }
  0x78   : > { %661 = vset.pattern.permute.xlu1 %v850_v13  ;;  %668 = vset.pattern.permute.xlu0 %v851_v14 }
  0x79   : > { %345 = vperm.xlu1 %661, %v1047_v2   ;;  %256 = vperm.xlu0 %668, %v1047_v2  }
  0x7d   : > { %663 = vset.pattern.permute.xlu1 %v852_v15  ;;  %671 = vset.pattern.permute.xlu0 %v853_v16 }
  0x7e   : > { %356 = vperm.xlu1 %663, %v1047_v2   ;;  %312 = vperm.xlu0 %671, %v1047_v2  }
  0x82   : > { %664 = vset.pattern.permute.xlu1 %v854_v17  ;;  %674 = vset.pattern.permute.xlu0 %v855_v18 }
  0x83   : > { %363 = vperm.xlu1 %664, %v1047_v2   ;;  %377 = vperm.xlu0 %674, %v1047_v2  }
  0x87   : > { %666 = vset.pattern.permute.xlu1 %v856_v19  ;;  %677 = vset.pattern.permute.xlu0 %v857_v20 }
  0x88   : > { %241 = vperm.xlu1 %666, %v1047_v2   ;;  %406 = vperm.xlu0 %677, %v1047_v2  }
  0x8c   : > { %667 = vset.pattern.permute.xlu1 %v858_v21 }
  0x8d   : > { %246 = vperm.xlu1 %667, %v1047_v2  }
  0x91   : > { %669 = vset.pattern.permute.xlu1 %v859_v22 }
  0x92   : > { %267 = vperm.xlu1 %669, %v1047_v2  }
  0x96   : > { %670 = vset.pattern.permute.xlu1 %v860_v23 }
  0x97   : > { %307 = vperm.xlu1 %670, %v1047_v2  }
  0x9b   : > { %672 = vset.pattern.permute.xlu1 %v861_v24 }
  0x9c   : > { %324 = vperm.xlu1 %672, %v1047_v2  }
  0xa0   : > { %673 = vset.pattern.permute.xlu1 %v862_v25 }
  0xa1   : > { %336 = vperm.xlu1 %673, %v1047_v2  }
  0xa5   : > { %675 = vset.pattern.permute.xlu1 %v863_v26 }
  0xa6   : > { %382 = vperm.xlu1 %675, %v1047_v2  }
  0xaa   : > { %676 = vset.pattern.permute.xlu1 %v864_v27 }
  0xab   : > { %394 = vperm.xlu1 %676, %v1047_v2  }
  0xda   : > { %v217_v28 = vpop.permute.xlu1 %216  ;;  %v198_v31 = vpop.permute.xlu0 %197 }
  0xdb   : > { %v204_v44 = vmul.f32 %v203_v39, %v198_v31  ;;  %v223_v50 = vmul.f32 %v222_v46, %v217_v28 }
  0xdf   : > { %v228_v29 = vpop.permute.xlu1 %227  ;;  %v207_v36 = vpop.permute.xlu0 %206 }
  0xe0   : > { %v213_v45 = vmul.f32 %v212_v40, %v207_v36 }
  0xe2   : > { %v214_v49 = vadd.f32 %v213_v45, %v204_v44 }
  0xe4   : > { %v235_v32 = vpop.permute.xlu1 %234  ;;  %v276_v41 = vpop.permute.xlu0 %275  ;;  %v224_v54 = vadd.f32 %v223_v50, %v214_v49 }
  0xe5   : > { %v278_v51 = vmul.f32 %v276_v41, %v203_v39 }
  0xe6   : > { %v225_v60 = vmul.f32 %v224_v54, %v224_v54 }
  0xe8   : > { %v230_v2 = vmul.f32 %v228_v29, %v225_v60  ;;  %v237_v4 = vmul.f32 %v235_v32, %v225_v60 }
  0xe9   : > { %v281_v37 = vpop.permute.xlu1 %280  ;;  %v294_v47 = vpop.permute.xlu0 %293 }
  0xea   : > { %v283_v52 = vmul.f32 %v281_v37, %v212_v40  ;;  %v231_v10 = vmul.f32 1.442695, %v230_v2  ;;  %v238_v12 = vmul.f32 1.442695, %v237_v4 }
  0xec   : > { %v284_v59 = vadd.f32 %v283_v52, %v278_v51  ;;  %678 = vpow2.f32 %v231_v10 }
  0xed   : > { %680 = vpow2.f32 %v238_v12 }
  0xee   : > { %v287_v42 = vpop.permute.xlu1 %286  ;;  %v351_v56 = vpop.permute.xlu0 %350 }
  0xef   : > { %v289_v55 = vmul.f32 %v287_v42, %v222_v46  ;;  %v353_v57 = vmul.f32 %v351_v56, %v212_v40 }
  0xf1   : > { %v290_v61 = vadd.f32 %v289_v55, %v284_v59 }
  0xf3   : > { %v301_v48 = vpop.permute.xlu1 %300  ;;  %v291_v3 = vmul.f32 %v290_v61, %v290_v61  ;;  %v371_v7 = vpop.permute.xlu0 %370 }
  0xf5   : > { %v296_v11 = vmul.f32 %v294_v47, %v291_v3  ;;  %v303_v13 = vmul.f32 %v301_v48, %v291_v3 }
  0xf6   : > { %v679_v22 = vpop.eup %678 }
  0xf7   : > { %v297_v17 = vmul.f32 1.442695, %v296_v11  ;;  %v304_v18 = vmul.f32 1.442695, %v303_v13  ;;  %v681_v23 = vpop.eup %680  ;;  %v252_v34 = vmul.f32 %v679_v22, %v679_v22 }
  0xf8   : > { %v346_v53 = vpop.permute.xlu1 %345  ;;  %v257_v20 = vpop.permute.xlu0 %256  ;;  %v253_v31 = vmul.f32 %v681_v23, %v681_v23 }
  0xf9   : > { %v348_v58 = vmul.f32 %v346_v53, %v203_v39  ;;  %v263_v41 = vmul.f32 %v679_v22, %v252_v34 }
  0xfa   : > { %v264_v38 = vmul.f32 %v681_v23, %v253_v31 }
  0xfb   : > { %v354_v63 = vadd.f32 %v353_v57, %v348_v58 }
  0xfd   : > { %v357_v62 = vpop.permute.xlu1 %356  ;;  %v313_v24 = vpop.permute.xlu0 %312 }
  0xfe   : > { %v359_v0 = vmul.f32 %v357_v62, %v222_v46 }
 0x100   : > { %v360_v1 = vadd.f32 %v359_v0, %v354_v63 }
 0x102   : > { %v364_v5 = vpop.permute.xlu1 %363  ;;  %v361_v6 = vmul.f32 %v360_v1, %v360_v1  ;;  %v378_v30 = vpop.permute.xlu0 %377 }
 0x104   : > { %v366_v8 = vmul.f32 %v364_v5, %v361_v6  ;;  %v373_v9 = vmul.f32 %v371_v7, %v361_v6  ;;  %v259_v7 = vmul.f32 %v257_v20, %v253_v31 }
 0x106   : > { %v367_v14 = vmul.f32 1.442695, %v366_v8  ;;  %v374_v16 = vmul.f32 1.442695, %v373_v9 }
 0x107   : > { %v242_v15 = vpop.permute.xlu1 %241  ;;  %v407_v42 = vpop.permute.xlu0 %406 }
 0x108   : > { %682 = vpow2.f32 %v367_v14  ;;  %v265_v46 = vmul.f32 %v263_v41, %v242_v15  ;;  %v244_v57 = vmul.f32 %v679_v22, %v242_v15  ;;  %v254_v2 = vmul.f32 %v252_v34, %v242_v15 }
 0x109   : > { %684 = vpow2.f32 %v374_v16 }
 0x10a   : > { %686 = vpow2.f32 %v297_v17  ;;  %v260_v11 = vadd.f32 %v259_v7, %v254_v2 }
 0x10b   : > { %688 = vpow2.f32 %v304_v18 }
 0x10c   : > { %v247_v19 = vpop.permute.xlu1 %246 }
 0x10d   : > { %v249_v54 = vmul.f32 %v681_v23, %v247_v19 }
 0x10f   : > { %v250_v63 = vadd.f32 %v249_v54, %v244_v57 }
 0x111   : > { %v268_v21 = vpop.permute.xlu1 %267 }
 0x112   : > { %v683_v25 = vpop.eup %682  ;;  %v270_v43 = vmul.f32 %v268_v21, %v264_v38 }
 0x113   : > { %v685_v26 = vpop.eup %684  ;;  %v390_v32 = vmul.f32 %v683_v25, %v683_v25  ;;  %v380_v0 = vmul.f32 %v683_v25, %v378_v30 }
 0x114   : > { %v687_v28 = vpop.eup %686  ;;  %v391_v33 = vmul.f32 %v685_v26, %v685_v26  ;;  %v271_v55 = vadd.f32 %v270_v43, %v265_v46 }
 0x115   : > { %v689_v29 = vpop.eup %688  ;;  %v320_v35 = vmul.f32 %v687_v28, %v687_v28  ;;  %v402_v39 = vmul.f32 %v683_v25, %v390_v32  ;;  %v392_v12 = vmul.f32 %v390_v32, %v378_v30 }
 0x116   : > { %v308_v27 = vpop.permute.xlu1 %307  ;;  %v321_v37 = vmul.f32 %v689_v29, %v689_v29  ;;  %v403_v40 = vmul.f32 %v685_v26, %v391_v33  ;;  %v315_v53 = vmul.f32 %v689_v29, %v313_v24 }
 0x117   : > { %v332_v44 = vmul.f32 %v687_v28, %v320_v35  ;;  %v310_v47 = vmul.f32 %v687_v28, %v308_v27  ;;  %v404_v49 = vmul.f32 %v402_v39, %v378_v30  ;;  %v322_v3 = vmul.f32 %v320_v35, %v308_v27 }
 0x118   : > { %v333_v45 = vmul.f32 %v689_v29, %v321_v37  ;;  %v409_v51 = vmul.f32 %v407_v42, %v403_v40 }
 0x119   : > { %v334_v50 = vmul.f32 %v332_v44, %v308_v27  ;;  %v316_v58 = vadd.f32 %v315_v53, %v310_v47 }
 0x11a   : > { %v410_v59 = vadd.f32 %v409_v51, %v404_v49 }
 0x11b   : > { %v325_v36 = vpop.permute.xlu1 %324  ;;  %v318_v5 = vadd.f32 %v316_v58, %v250_v63 }
 0x11c   : > { %v327_v60 = vmul.f32 %v325_v36, %v321_v37 }
 0x11e   : > { %v328_v8 = vadd.f32 %v327_v60, %v322_v3 }
 0x120   : > { %v337_v48 = vpop.permute.xlu1 %336  ;;  %v330_v14 = vadd.f32 %v328_v8, %v260_v11 }
 0x121   : > { %v339_v52 = vmul.f32 %v337_v48, %v333_v45 }
 0x123   : > { %v340_v56 = vadd.f32 %v339_v52, %v334_v50 }
 0x125   : > { %v342_v61 = vadd.f32 %v340_v56, %v271_v55  ;;  %v383_v62 = vpop.permute.xlu1 %382 }
 0x126   : > { %v385_v1 = vmul.f32 %v685_v26, %v383_v62 }
 0x127   : > { %v412_v4 = vadd.f32 %v410_v59, %v342_v61 }
 0x128   : > { %v386_v6 = vadd.f32 %v385_v1, %v380_v0 }
 0x129   : > { %543 = vst [vmem:[%s192_s19 + $0x10] sm:$0xff] %v412_v4 }
 0x12a   : > { %v388_v9 = vadd.f32 %v386_v6, %v318_v5  ;;  %v395_v10 = vpop.permute.xlu1 %394 }
 0x12b   : > { %v397_v13 = vmul.f32 %v395_v10, %v391_v33 }
 0x12c   : > { %389 = vst [vmem:[%s192_s19] sm:$0xff] %v388_v9 }
 0x12d   : > { %v398_v15 = vadd.f32 %v397_v13, %v392_v12 }
 0x12f   : > { %v400_v16 = vadd.f32 %v398_v15, %v330_v14 }
 0x131   : > { %541 = vst [vmem:[%s192_s19 + $0x8] sm:$0xff] %v400_v16 }
 0x132   : > { %761 = shalt.err (!%p758_p5)
}
 0x133   : > { %s762_s27 = scalar_lea.hbm %s1081_s8, 384  ;;  %s766_s6 = scalar_lea.hbm %s1134_s2, 768 }
 0x134   : > { %p763_p10 = scmp.ne.s32.totalorder %s1081_s8, %s762_s27  ;;  %p767_p7 = scmp.lt.u32.totalorder %s1081_s8, %s1134_s2 }
 0x135   : > { %p768_p3 = scmp.lt.u32.totalorder %s766_s6, %s762_s27  ;;  %p770_p11 = scmp.lt.u32.totalorder %s762_s27, %s1081_s8 }
 0x136   : > { %p764_p1 = pnand %p763_p10, %p985_p13 }
 0x137   : > { %p769_p4 = por %p768_p3, %p767_p7 }
 0x138   : > { %p765_p2 = pneg %p764_p1 }
 0x139   : > { %p771_p6 = por %p770_p11, %p769_p4 }
 0x13b   : > { %p772_p8 = pnand %p771_p6, %p765_p2 }
 0x13d   : > { %775 = shalt.err (!%p772_p8)
}
 0x13e   : > { %s866_s17 = smov 128   ;;  %s867_s19 = smov 256  }
 0x13f   : > { %s868_s21 = smov 8  }
 0x140   : > { %554 = dma.vmem_to_hbm [thread:$0]  (%p985_p13), %s1083_s3, 384, %s1081_s8, %s415_s12, %s866_s17, %s867_s19, %s868_s21  }
 0x141 PF: > { %s443_s4 = sand.u32 1, %s814_s9   ;;  %p1153_p9 = scmp.ne.s32.totalorder %s1142_s20, 0 }
 0x142   : > { %p1154_p12 = scmp.ge.s32.totalorder %s834_s14, 2  ;;  %s444_s26 = scalar_lea.sflag [#allocation4], %s443_s4 }
 0x144   : > { %p565_p0 = pnand %p1154_p12, %p1153_p9 }
 0x146   : > { %809 = dma.done.wait (!%p565_p0), %s444_s26, 384  }
 0x147   : > { %811 = vsyncadd (!%p565_p0), %s444_s26, 4294966912  ;;  %s19_s14 = sadd.s32 1, %s834_s14   ;;  %s1155_s9 = smov %s818_s10 }
 0x148   : > { %p16_p5 = scmp.ge.s32.totalorder %s19_s14, 4   ;;  %s1156_s10 = smov %s822_s11 }
 0x149   : > { %s1157_s11 = smov %s993_s28  ;;  %s1158_s12 = smov %s830_s13 }
 0x14a   : > { %s1159_s13 = smov %s1161_s25  ;;  %18 = sbr.rel (!%p16_p5) target bundleno = 7 (0x7), region = 81 }
 0x151   :  { %449 = vsyncpa [#allocation3], 1 }
 0x152   :  { %451 = vsyncpa [#allocation3 + $0x1], 1 }
 0x153   :  { %452 = vsyncpa [#allocation6], 1 }
 0x154   :  { %454 = vsyncpa [#allocation6 + $0x1], 1 }
 0x155   :  { %455 = vsyncpa [#allocation4], 1 }
 0x156   :  { %457 = vsyncpa [#allocation4 + $0x1], 1 }

</bundles_post_ra>
